<compile_context>
chip_gen: v5e
topology: v5e:2x2
jax: 0.10.0
libtpu: 0.0.40
codegen_flags: <defaults>
</compile_context>

<pallas_src>
import functools
import math

import jax
import jax.numpy as jnp
from jax.experimental import pallas as pl
from jax.experimental.pallas import tpu as pltpu


def _round_up(x, m):
    return ((x + m - 1) // m) * m


def _caan_kernel(x_q_ref, x_kv_ref, wq_ref, bq_ref, wkv_ref, bkv_ref,
                 ws1_ref, bs1_ref, w2_ref, bs2_ref, o_ref, *,
                 scale, approx_recip):
    qp = wq_ref.shape[1]          # lane-padded q/k/v width
    mm_dtype = wq_ref.dtype       # bf16 on the perf path, f32 on the check path

    # --- projections (MXU, f32 accumulation) --------------------------------
    # q for this block of query rows; K and V fused into one matmul over the
    # full, VMEM-resident asset set.
    q = jnp.dot(x_q_ref[...], wq_ref[...],
                preferred_element_type=jnp.float32) + bq_ref[...]
    kv = jnp.dot(x_kv_ref[...], wkv_ref[...],
                 preferred_element_type=jnp.float32) + bkv_ref[...]
    k = kv[:, :qp]
    v = kv[:, qp:]

    # --- attention logits: contract last dims of both operands --------------
    logits = jax.lax.dot_general(
        q.astype(mm_dtype), k.astype(mm_dtype),
        dimension_numbers=(((1,), (1,)), ((), ())),
        preferred_element_type=jnp.float32) * scale

    # --- numerically stable softmax (f32) ------------------------------------
    logits = logits - jnp.max(logits, axis=-1, keepdims=True)
    p = jnp.exp(logits)
    denom = jnp.sum(p, axis=-1, keepdims=True)
    p = p * pl.reciprocal(denom, approx=approx_recip)

    # --- context: attn @ v ----------------------------------------------------
    ctx = jnp.dot(p.astype(mm_dtype), v.astype(mm_dtype),
                  preferred_element_type=jnp.float32)

    # --- scorer MLP: Linear -> ReLU -> (VPU mul + lane reduce) ---------------
    h = jnp.dot(ctx.astype(mm_dtype), ws1_ref[...],
                preferred_element_type=jnp.float32) + bs1_ref[...]
    h = jnp.maximum(h, 0.0)
    s = jnp.sum(h * w2_ref[...], axis=-1, keepdims=True) + bs2_ref[...]

    o_ref[...] = s.astype(o_ref.dtype)


def caan_forward(x, params, *, matmul_dtype=jnp.bfloat16, block_q=256):
    """x: (N, input_dim) f32.  Returns scores: (N,) f32."""
    N, D = x.shape
    qdim = params["wq"].shape[1]
    hdim = params["ws1"].shape[1]

    qp = _round_up(qdim, 128)     # lane-dense Q/K/V width
    hp = _round_up(hdim, 128)     # lane-dense scorer hidden width

    def pad2(a, rows, cols, dtype):
        out = jnp.zeros((rows, cols), jnp.float32)
        out = out.at[:a.shape[0], :a.shape[1]].set(a)
        return out.astype(dtype)

    wq = pad2(params["wq"], D, qp, matmul_dtype)
    bq = pad2(params["bq"], 1, qp, jnp.float32)
    wkv = jnp.concatenate(
        [pad2(params["wk"], D, qp, matmul_dtype),
         pad2(params["wv"], D, qp, matmul_dtype)], axis=1)
    bkv = jnp.concatenate(
        [pad2(params["bk"], 1, qp, jnp.float32),
         pad2(params["bv"], 1, qp, jnp.float32)], axis=1)
    ws1 = pad2(params["ws1"], qp, hp, matmul_dtype)
    bs1 = pad2(params["bs1"], 1, hp, jnp.float32)
    w2row = pad2(params["ws2"].T, 1, hp, jnp.float32)   # VPU-reduce operand, f32
    bs2 = params["bs2"].reshape(1, 1).astype(jnp.float32)

    # Row-blocked query grid. Padded query rows are junk and sliced off at the
    # end; the K/V input is NOT padded so real rows' softmax is untouched.
    bq_rows = min(block_q, _round_up(N, 8))
    n_pad = _round_up(N, bq_rows)
    x_q = jnp.zeros((n_pad, D), matmul_dtype).at[:N].set(x.astype(matmul_dtype))
    x_kv = x.astype(matmul_dtype)

    kernel = functools.partial(
        _caan_kernel,
        scale=1.0 / math.sqrt(float(qdim)),
        approx_recip=(jnp.dtype(matmul_dtype) == jnp.dtype(jnp.bfloat16)),
    )

    out = pl.pallas_call(
        kernel,
        out_shape=jax.ShapeDtypeStruct((n_pad, 1), jnp.float32),
        grid_spec=pltpu.PrefetchScalarGridSpec(
            num_scalar_prefetch=0,
            grid=(n_pad // bq_rows,),
            in_specs=[
                pl.BlockSpec((bq_rows, D), lambda i: (i, 0)),   # query rows (blocked)
                pl.BlockSpec((N, D),       lambda i: (0, 0)),   # full x for K/V (resident)
                pl.BlockSpec((D, qp),      lambda i: (0, 0)),   # Wq
                pl.BlockSpec((1, qp),      lambda i: (0, 0)),   # bq
                pl.BlockSpec((D, 2 * qp),  lambda i: (0, 0)),   # Wk|Wv fused
                pl.BlockSpec((1, 2 * qp),  lambda i: (0, 0)),   # bk|bv fused
                pl.BlockSpec((qp, hp),     lambda i: (0, 0)),   # scorer W1
                pl.BlockSpec((1, hp),      lambda i: (0, 0)),   # scorer b1
                pl.BlockSpec((1, hp),      lambda i: (0, 0)),   # scorer W2 (row)
                pl.BlockSpec((1, 1),       lambda i: (0, 0)),   # scorer b2
            ],
            out_specs=pl.BlockSpec((bq_rows, 1), lambda i: (i, 0)),
        ),
        compiler_params=pltpu.CompilerParams(
            dimension_semantics=("parallel",),
            vmem_limit_bytes=48 * 1024 * 1024,
        ),
    )(x_q, x_kv, wq, bq, wkv, bkv, ws1, bs1, w2row, bs2)

    # torch .squeeze(): (N, 1) -> (N,)
    return out[:N, 0]


def init_params(key, input_dim, q_k_v_dim):
    """Deterministic synthetic init. Weights stored as (in_dim, out_dim)."""
    half = q_k_v_dim // 2
    keys = jax.random.split(key, 12)

    def lin(kw, kb, fan_in, fan_out):
        bound = 1.0 / math.sqrt(fan_in)
        w = jax.random.uniform(kw, (fan_in, fan_out), jnp.float32, -bound, bound)
        b = jax.random.uniform(kb, (1, fan_out), jnp.float32, -bound, bound)
        return w, b

    wq, bq = lin(keys[0], keys[1], input_dim, q_k_v_dim)
    wk, bk = lin(keys[2], keys[3], input_dim, q_k_v_dim)
    wv, bv = lin(keys[4], keys[5], input_dim, q_k_v_dim)
    # W_O exists in the module but is unused in forward(); created for parity only.
    wo, bo = lin(keys[6], keys[7], q_k_v_dim, input_dim)
    ws1, bs1 = lin(keys[8], keys[9], q_k_v_dim, half)
    ws2, bs2 = lin(keys[10], keys[11], half, 1)

    return dict(wq=wq, bq=bq, wk=wk, bk=bk, wv=wv, bv=bv,
                wo=wo, bo=bo, ws1=ws1, bs1=bs1, ws2=ws2, bs2=bs2)


def caan_reference(x, params):
    """Pure-JAX reference mirroring the torch forward exactly (f32)."""
    q = x @ params["wq"] + params["bq"]
    k = x @ params["wk"] + params["bk"]
    v = x @ params["wv"] + params["bv"]
    attn = (q @ k.T) / math.sqrt(q.shape[-1])
    attn = jax.nn.softmax(attn, axis=-1)[..., None]          # (N, N, 1)
    ctx = jnp.sum(v[None, :, :] * attn, axis=1)              # (N, Q)
    h = jnp.maximum(ctx @ params["ws1"] + params["bs1"], 0.0)
    s = h @ params["ws2"] + params["bs2"]
    return jnp.squeeze(s)


if __name__ == "__main__":
    N = 8            # number of assets (sequence length)
    input_dim = 32
    q_k_v_dim = 16

    key = jax.random.PRNGKey(0)
    kx, kp = jax.random.split(key)
    x = jax.random.normal(kx, (N, input_dim), dtype=jnp.float32)
    params = init_params(kp, input_dim, q_k_v_dim)

    ref = caan_reference(x, params)

    # 1) exact-precision path: validates the restructured kernel (lane padding,
    #    fused KV, dot_general, VPU score reduce) against the f32 reference.
    scores_f32 = jax.block_until_ready(
        caan_forward(x, params, matmul_dtype=jnp.float32))
    assert scores_f32.shape == (N,)
    assert jnp.allclose(scores_f32, ref, atol=1e-4, rtol=1e-4), (scores_f32, ref)

    # 2) performance path: bf16 MXU operands + EUP approx reciprocal
    #    (softmax / accumulation in f32). bf16 carries ~3 decimal digits, hence
    #    the bf16-appropriate tolerance against the exact-f32 reference.
    scores = jax.block_until_ready(
        caan_forward(x, params, matmul_dtype=jnp.bfloat16))
    assert scores.shape == (N,)
    assert jnp.allclose(scores, ref, atol=5e-2, rtol=5e-2), (scores, ref)

    print("KERNEL_OK")
</pallas_src>

<mosaic_0001>
module attributes {stable_mosaic.version = 11 : i64} {
  func.func @_caan_kernel(%arg0: i32, %arg1: memref<8x32xf32, #tpu.memory_space<vmem>>, %arg2: memref<8x32xf32, #tpu.memory_space<vmem>>, %arg3: memref<32x128xf32, #tpu.memory_space<vmem>>, %arg4: memref<1x128xf32, #tpu.memory_space<vmem>>, %arg5: memref<32x256xf32, #tpu.memory_space<vmem>>, %arg6: memref<1x256xf32, #tpu.memory_space<vmem>>, %arg7: memref<128x128xf32, #tpu.memory_space<vmem>>, %arg8: memref<1x128xf32, #tpu.memory_space<vmem>>, %arg9: memref<1x128xf32, #tpu.memory_space<vmem>>, %arg10: memref<1x1xf32, #tpu.memory_space<vmem>>, %arg11: memref<8x1xf32, #tpu.memory_space<vmem>>) attributes {dimension_semantics = [#tpu.dimension_semantics<parallel>], iteration_bounds = array<i64: 1>, scalar_prefetch = 0 : i64, scratch_operands = 0 : i64, tpu.core_type = #tpu.core_type<tc>, window_params = [{transform_indices = @transform_0, window_bounds = array<i64: 8, 32>}, {pipeline_mode = #tpu.pipeline_mode<synchronous>, transform_indices = @transform_1, window_bounds = array<i64: 8, 32>}, {pipeline_mode = #tpu.pipeline_mode<synchronous>, transform_indices = @transform_2, window_bounds = array<i64: 32, 128>}, {pipeline_mode = #tpu.pipeline_mode<synchronous>, transform_indices = @transform_3, window_bounds = array<i64: 1, 128>}, {pipeline_mode = #tpu.pipeline_mode<synchronous>, transform_indices = @transform_4, window_bounds = array<i64: 32, 256>}, {pipeline_mode = #tpu.pipeline_mode<synchronous>, transform_indices = @transform_5, window_bounds = array<i64: 1, 256>}, {pipeline_mode = #tpu.pipeline_mode<synchronous>, transform_indices = @transform_6, window_bounds = array<i64: 128, 128>}, {pipeline_mode = #tpu.pipeline_mode<synchronous>, transform_indices = @transform_7, window_bounds = array<i64: 1, 128>}, {pipeline_mode = #tpu.pipeline_mode<synchronous>, transform_indices = @transform_8, window_bounds = array<i64: 1, 128>}, {pipeline_mode = #tpu.pipeline_mode<synchronous>, transform_indices = @transform_9, window_bounds = array<i64: 1, 1>}, {transform_indices = @transform_10, window_bounds = array<i64: 8, 1>}]} {
    %c0 = arith.constant 0 : index
    %c0_0 = arith.constant 0 : index
    %0 = vector.load %arg1[%c0, %c0_0] : memref<8x32xf32, #tpu.memory_space<vmem>>, vector<8x32xf32>
    %c0_1 = arith.constant 0 : index
    %c0_2 = arith.constant 0 : index
    %1 = vector.load %arg3[%c0_1, %c0_2] : memref<32x128xf32, #tpu.memory_space<vmem>>, vector<32x128xf32>
    %cst = arith.constant dense<0.000000e+00> : vector<8x128xf32>
    %2 = tpu.matmul %0, %1, %cst {dimension_numbers = #tpu.dot_dimension_numbers<[1], [0], [0], [1], [0, 0, 1, 1], [], []>} : vector<8x32xf32>, vector<32x128xf32>, vector<8x128xf32> -> vector<8x128xf32>
    %c0_3 = arith.constant 0 : index
    %c0_4 = arith.constant 0 : index
    %3 = vector.load %arg4[%c0_3, %c0_4] : memref<1x128xf32, #tpu.memory_space<vmem>>, vector<1x128xf32>
    %4 = vector.broadcast %3 : vector<1x128xf32> to vector<8x128xf32>
    %5 = arith.addf %2, %4 : vector<8x128xf32>
    %c0_5 = arith.constant 0 : index
    %c0_6 = arith.constant 0 : index
    %6 = vector.load %arg2[%c0_5, %c0_6] : memref<8x32xf32, #tpu.memory_space<vmem>>, vector<8x32xf32>
    %c0_7 = arith.constant 0 : index
    %c0_8 = arith.constant 0 : index
    %7 = vector.load %arg5[%c0_7, %c0_8] : memref<32x256xf32, #tpu.memory_space<vmem>>, vector<32x256xf32>
    %cst_9 = arith.constant dense<0.000000e+00> : vector<8x256xf32>
    %8 = tpu.matmul %6, %7, %cst_9 {dimension_numbers = #tpu.dot_dimension_numbers<[1], [0], [0], [1], [0, 0, 1, 1], [], []>} : vector<8x32xf32>, vector<32x256xf32>, vector<8x256xf32> -> vector<8x256xf32>
    %c0_10 = arith.constant 0 : index
    %c0_11 = arith.constant 0 : index
    %9 = vector.load %arg6[%c0_10, %c0_11] : memref<1x256xf32, #tpu.memory_space<vmem>>, vector<1x256xf32>
    %10 = vector.broadcast %9 : vector<1x256xf32> to vector<8x256xf32>
    %11 = arith.addf %8, %10 : vector<8x256xf32>
    %12 = vector.extract_strided_slice %11 {offsets = [0, 0], sizes = [8, 128], strides = [1, 1]} : vector<8x256xf32> to vector<8x128xf32>
    %13 = vector.extract_strided_slice %11 {offsets = [0, 128], sizes = [8, 128], strides = [1, 1]} : vector<8x256xf32> to vector<8x128xf32>
    %cst_12 = arith.constant dense<0.000000e+00> : vector<8x8xf32>
    %14 = tpu.matmul %5, %12, %cst_12 {dimension_numbers = #tpu.dot_dimension_numbers<[1], [1], [0], [0], [0, 0, 1, 0], [], []>} : vector<8x128xf32>, vector<8x128xf32>, vector<8x8xf32> -> vector<8x8xf32>
    %cst_13 = arith.constant 2.500000e-01 : f32
    %15 = vector.broadcast %cst_13 : f32 to vector<8x8xf32>
    %16 = arith.mulf %14, %15 : vector<8x8xf32>
    %cst_14 = arith.constant dense<0xFF800000> : vector<8xf32>
    %17 = vector.multi_reduction <maximumf>, %16, %cst_14 [1] : vector<8x8xf32> to vector<8xf32>
    %18 = vector.shape_cast %17 : vector<8xf32> to vector<8x1xf32>
    %19 = vector.broadcast %18 : vector<8x1xf32> to vector<8x8xf32>
    %20 = arith.subf %16, %19 : vector<8x8xf32>
    %21 = math.exp %20 : vector<8x8xf32>
    %cst_15 = arith.constant dense<0.000000e+00> : vector<8xf32>
    %22 = vector.multi_reduction <add>, %21, %cst_15 [1] : vector<8x8xf32> to vector<8xf32>
    %23 = vector.shape_cast %22 : vector<8xf32> to vector<8x1xf32>
    %24 = tpu.reciprocal %23 : vector<8x1xf32> -> vector<8x1xf32>
    %25 = vector.broadcast %24 : vector<8x1xf32> to vector<8x8xf32>
    %26 = arith.mulf %21, %25 : vector<8x8xf32>
    %cst_16 = arith.constant dense<0.000000e+00> : vector<8x128xf32>
    %27 = tpu.matmul %26, %13, %cst_16 {dimension_numbers = #tpu.dot_dimension_numbers<[1], [0], [0], [1], [0, 0, 1, 1], [], []>} : vector<8x8xf32>, vector<8x128xf32>, vector<8x128xf32> -> vector<8x128xf32>
    %c0_17 = arith.constant 0 : index
    %c0_18 = arith.constant 0 : index
    %28 = vector.load %arg7[%c0_17, %c0_18] : memref<128x128xf32, #tpu.memory_space<vmem>>, vector<128x128xf32>
    %cst_19 = arith.constant dense<0.000000e+00> : vector<8x128xf32>
    %29 = tpu.matmul %27, %28, %cst_19 {dimension_numbers = #tpu.dot_dimension_numbers<[1], [0], [0], [1], [0, 0, 1, 1], [], []>} : vector<8x128xf32>, vector<128x128xf32>, vector<8x128xf32> -> vector<8x128xf32>
    %c0_20 = arith.constant 0 : index
    %c0_21 = arith.constant 0 : index
    %30 = vector.load %arg8[%c0_20, %c0_21] : memref<1x128xf32, #tpu.memory_space<vmem>>, vector<1x128xf32>
    %31 = vector.broadcast %30 : vector<1x128xf32> to vector<8x128xf32>
    %32 = arith.addf %29, %31 : vector<8x128xf32>
    %cst_22 = arith.constant 0.000000e+00 : f32
    %33 = vector.broadcast %cst_22 : f32 to vector<8x128xf32>
    %34 = arith.maximumf %32, %33 : vector<8x128xf32>
    %c0_23 = arith.constant 0 : index
    %c0_24 = arith.constant 0 : index
    %35 = vector.load %arg9[%c0_23, %c0_24] : memref<1x128xf32, #tpu.memory_space<vmem>>, vector<1x128xf32>
    %36 = vector.broadcast %35 : vector<1x128xf32> to vector<8x128xf32>
    %37 = arith.mulf %34, %36 : vector<8x128xf32>
    %cst_25 = arith.constant dense<0.000000e+00> : vector<8xf32>
    %38 = vector.multi_reduction <add>, %37, %cst_25 [1] : vector<8x128xf32> to vector<8xf32>
    %39 = vector.shape_cast %38 : vector<8xf32> to vector<8x1xf32>
    %c0_26 = arith.constant 0 : index
    %c0_27 = arith.constant 0 : index
    %40 = vector.load %arg10[%c0_26, %c0_27] : memref<1x1xf32, #tpu.memory_space<vmem>>, vector<1x1xf32>
    %41 = vector.broadcast %40 : vector<1x1xf32> to vector<8x1xf32>
    %42 = arith.addf %39, %41 : vector<8x1xf32>
    %c0_28 = arith.constant 0 : index
    %c0_29 = arith.constant 0 : index
    %43 = vector.load %arg11[%c0_28, %c0_29] : memref<8x1xf32, #tpu.memory_space<vmem>>, vector<8x1xf32>
    tpu.vector_store %arg11[%c0_28, %c0_29], %42 {strides = array<i32>} : memref<8x1xf32, #tpu.memory_space<vmem>>, vector<8x1xf32>,
    return
  }
  func.func @transform_0(%arg0: i32) -> (i32, i32) {
    %c0_i32 = arith.constant 0 : i32
    %c0_i32_0 = arith.constant 0 : i32
    return %arg0, %c0_i32 : i32, i32
  }
  func.func @transform_1(%arg0: i32) -> (i32, i32) {
    %c0_i32 = arith.constant 0 : i32
    %c0_i32_0 = arith.constant 0 : i32
    %c0_i32_1 = arith.constant 0 : i32
    return %c0_i32, %c0_i32_0 : i32, i32
  }
  func.func @transform_2(%arg0: i32) -> (i32, i32) {
    %c0_i32 = arith.constant 0 : i32
    %c0_i32_0 = arith.constant 0 : i32
    %c0_i32_1 = arith.constant 0 : i32
    return %c0_i32, %c0_i32_0 : i32, i32
  }
  func.func @transform_3(%arg0: i32) -> (i32, i32) {
    %c0_i32 = arith.constant 0 : i32
    %c0_i32_0 = arith.constant 0 : i32
    %c0_i32_1 = arith.constant 0 : i32
    return %c0_i32, %c0_i32_0 : i32, i32
  }
  func.func @transform_4(%arg0: i32) -> (i32, i32) {
    %c0_i32 = arith.constant 0 : i32
    %c0_i32_0 = arith.constant 0 : i32
    %c0_i32_1 = arith.constant 0 : i32
    return %c0_i32, %c0_i32_0 : i32, i32
  }
  func.func @transform_5(%arg0: i32) -> (i32, i32) {
    %c0_i32 = arith.constant 0 : i32
    %c0_i32_0 = arith.constant 0 : i32
    %c0_i32_1 = arith.constant 0 : i32
    return %c0_i32, %c0_i32_0 : i32, i32
  }
  func.func @transform_6(%arg0: i32) -> (i32, i32) {
    %c0_i32 = arith.constant 0 : i32
    %c0_i32_0 = arith.constant 0 : i32
    %c0_i32_1 = arith.constant 0 : i32
    return %c0_i32, %c0_i32_0 : i32, i32
  }
  func.func @transform_7(%arg0: i32) -> (i32, i32) {
    %c0_i32 = arith.constant 0 : i32
    %c0_i32_0 = arith.constant 0 : i32
    %c0_i32_1 = arith.constant 0 : i32
    return %c0_i32, %c0_i32_0 : i32, i32
  }
  func.func @transform_8(%arg0: i32) -> (i32, i32) {
    %c0_i32 = arith.constant 0 : i32
    %c0_i32_0 = arith.constant 0 : i32
    %c0_i32_1 = arith.constant 0 : i32
    return %c0_i32, %c0_i32_0 : i32, i32
  }
  func.func @transform_9(%arg0: i32) -> (i32, i32) {
    %c0_i32 = arith.constant 0 : i32
    %c0_i32_0 = arith.constant 0 : i32
    %c0_i32_1 = arith.constant 0 : i32
    return %c0_i32, %c0_i32_0 : i32, i32
  }
  func.func @transform_10(%arg0: i32) -> (i32, i32) {
    %c0_i32 = arith.constant 0 : i32
    %c0_i32_0 = arith.constant 0 : i32
    return %arg0, %c0_i32 : i32, i32
  }
}

</mosaic_0001>

<bundles_post_ra>
// kernel: tpu_custom_call.1
= control target key start
LH: loop header
LB: loop body
LE: loop exit
PB: predicated region body
PF: predicated region fallthrough
CT: control target
= control target key end

     0   :  { %s583_s0 = inlined_call_operand.hbm [shape: f32[8,32], index: 0, kind: input, shape index: {}]   ;;  %s584_s1 = inlined_call_operand.hbm [shape: f32[8,32], index: 1, kind: input, shape index: {}]   ;;  %s585_s2 = inlined_call_operand.hbm [shape: f32[32,128], index: 2, kind: input, shape index: {}]   ;;  %s586_s3 = inlined_call_operand.vmem [shape: f32[1,128], index: 3, kind: input, shape index: {}]   ;;  %s587_s4 = inlined_call_operand.hbm [shape: f32[32,256], index: 4, kind: input, shape index: {}]   ;;  %s588_s5 = inlined_call_operand.vmem [shape: f32[1,256], index: 5, kind: input, shape index: {}]   ;;  %s589_s6 = inlined_call_operand.hbm [shape: f32[128,128], index: 6, kind: input, shape index: {}]   ;;  %s590_s7 = inlined_call_operand.vmem [shape: f32[1,128], index: 7, kind: input, shape index: {}]   ;;  %s591_s8 = inlined_call_operand.vmem [shape: f32[1,128], index: 8, kind: input, shape index: {}]   ;;  %s592_s9 = inlined_call_operand.<no memory space> [shape: f32[1,1], index: 9, kind: input, shape index: {}]   ;;  %s593_s10 = inlined_call_operand.vmem [shape: f32[8,1], index: 10, kind: output, shape index: {}]  }
   0x1   :  { %v15_v0 = vstv %s592_s9 }
   0x2   :  { %16 = vst [vmem:[#allocation2] sm:$0x1] %v15_v0 }
   0x3   :  { %17 = vsyncpa [#allocation4], 0 }
   0x4   :  { %18 = vsyncpa [#allocation6], 0  ;;  %s36_s17 = sshll.u32 %s584_s1, 4  ;;  %s37_s17 = int_to_ptr.hbm [resolvable:$true] %s36_s17 }
   0x5   :  { %19 = vsyncpa [#allocation9], 0  ;;  %s480_s18 = smov [#allocation5]   ;;  %s61_s22 = sshll.u32 %s587_s4, 4  ;;  %s62_s22 = int_to_ptr.hbm [resolvable:$true] %s61_s22 }
   0x6   :  { %s38_s19 = sshll.u32 %s480_s18, 4  ;;  %s481_s23 = smov [#allocation8]   ;;  %s39_s19 = int_to_ptr.vmem [resolvable:$true] %s38_s19 }
   0x7   :  { %41 = dma.hbm_to_vmem [thread:$0]  %s37_s17, 128, %s39_s19, [#allocation6]  }
   0x8   :  { %s63_s9 = sshll.u32 %s481_s23, 4  ;;  %s482_s24 = smov 256   ;;  %s64_s9 = int_to_ptr.vmem [resolvable:$true] %s63_s9 }
   0x9   :  { %s483_s25 = smov 16   ;;  %s25_s1 = sshll.u32 %s583_s0, 4  ;;  %s26_s1 = int_to_ptr.hbm [resolvable:$true] %s25_s1 }
   0xa   :  { %69 = dma.hbm_to_vmem [thread:$0]  %s62_s22, 1024, %s64_s9, [#allocation9], %s482_s24, %s482_s24, %s483_s25  }
   0xb   :  { %s484_s28 = smov [#allocation3]   ;;  %s46_s4 = sshll.u32 %s585_s2, 4  ;;  %s47_s4 = int_to_ptr.hbm [resolvable:$true] %s46_s4 }
   0xc   :  { %s27_s29 = sshll.u32 %s484_s28, 4  ;;  %s485_s12 = smov [#allocation7]   ;;  %s28_s29 = int_to_ptr.vmem [resolvable:$true] %s27_s29 }
   0xd   :  { %30 = dma.hbm_to_vmem [thread:$0]  %s26_s1, 128, %s28_s29, [#allocation4]  }
   0xe   :  { %s48_s13 = sshll.u32 %s485_s12, 4  ;;  %s486_s14 = smov 128   ;;  %s49_s13 = int_to_ptr.vmem [resolvable:$true] %s48_s13 }
   0xf   :  { %s487_s15 = smov 8   ;;  %s76_s0 = sshll.u32 %s589_s6, 4  ;;  %s77_s0 = int_to_ptr.hbm [resolvable:$true] %s76_s0 }
  0x10   :  { %54 = dma.hbm_to_vmem [thread:$0]  %s47_s4, 512, %s49_s13, [#allocation6], %s486_s14, %s486_s14, %s487_s15  }
  0x11   :  { %s488_s18 = smov [#allocation10]  }
  0x12   :  { %s78_s19 = sshll.u32 %s488_s18, 4  ;;  %s79_s19 = int_to_ptr.vmem [resolvable:$true] %s78_s19 }
  0x13   :  { %84 = dma.hbm_to_vmem [thread:$0]  %s77_s0, 2048, %s79_s19, [#allocation9], %s486_s14, %s486_s14, %s487_s15  }
  0x14   :  { %474 = dma.done.wait [#allocation4], 128  }
  0x15   :  { %475 = vsyncadd [#allocation4], 4294967168 }
  0x16   :  { %476 = dma.done.wait [#allocation6], 640  }
  0x17   :  { %477 = vsyncadd [#allocation6], 4294966656 }
  0x18   :  { %478 = dma.done.wait [#allocation9], 3072  }
  0x19   :  { %479 = vsyncadd [#allocation9], 4294964224  ;;  %v115_v1 = vld [vmem:[#allocation7 + $0x18] sm:$0xff]  ;;  %v114_v2 = vld [vmem:[#allocation7 + $0x10] sm:$0xff]  ;;  %vm120_vm0 = vcmask 261120   ;;  %vm223_vm1 = vcmask 64512  }
  0x1a   :  { %136 = vmatpush.msra.mxu1 %v115_v1  ;;  %v113_v3 = vld [vmem:[#allocation7 + $0x8] sm:$0xff]  ;;  %v112_v4 = vld [vmem:[#allocation7] sm:$0xff]  ;;  %v111_v5 = vld [vmem:[#allocation3] sm:$0xff]  ;;  %vm324_vm6 = vcmask 7168  }
  0x1b   :  { %v151_v6 = vld [vmem:[#allocation8 + $0x30] sm:$0xff]  ;;  %v149_v7 = vld [vmem:[#allocation8 + $0x20] sm:$0xff]  ;;  %v144_v10 = vld [vmem:[#allocation5] sm:$0xff] }
  0x1c   :  { %137 = vmatpush.msra.mxu1 %v114_v2  ;;  %v147_v8 = vld [vmem:[#allocation8 + $0x10] sm:$0xff]  ;;  %v145_v9 = vld [vmem:[#allocation8] sm:$0xff]  ;;  %v346_v14 = vld [vmem:[%s586_s3] ss:$0 sm:$0xff] }
  0x1d   :  { %v153_v12 = vld [vmem:[%s588_s5] sm:$0x3]  ;;  %v152_v18 = vld [vmem:[#allocation8 + $0x38] sm:$0xff]  ;;  %v283_v36 = vld [vmem:[#allocation10 + $0x60] sm:$0xff] }
  0x1e   :  { %138 = vmatpush.msra.mxu1 %v113_v3  ;;  %v155_v13 = vperm.slane %v153_v12, 0  ;;  %194 = vmatpush.msra.mxu2 %v152_v18  ;;  %v150_v22 = vld [vmem:[#allocation8 + $0x28] sm:$0xff]  ;;  %v148_v23 = vld [vmem:[#allocation8 + $0x18] sm:$0xff]  ;;  %v156_v30 = vperm.slane %v153_v12, 1  ;;  %v285_v34 = vld [vmem:[#allocation10 + $0x70] sm:$0xff] }
  0x1f   :  { %v146_v24 = vld [vmem:[#allocation8 + $0x8] sm:$0xff]  ;;  %v286_v33 = vld [vmem:[#allocation10 + $0x78] sm:$0xff]  ;;  %v281_v38 = vld [vmem:[#allocation10 + $0x50] sm:$0xff] }
  0x20   :  { %139 = vmatpush.msra.mxu1 %v112_v4  ;;  %195 = vmatpush.msra.mxu2 %v150_v22  ;;  %v284_v35 = vld [vmem:[#allocation10 + $0x68] sm:$0xff]  ;;  %v282_v37 = vld [vmem:[#allocation10 + $0x58] sm:$0xff]  ;;  %v279_v41 = vld [vmem:[#allocation10 + $0x40] sm:$0xff] }
  0x21   :  { %333 = vmatmul.msk.f32.vlgmr.msra.gmra.mxu1 %vm120_vm0, %v111_v5  ;;  %291 = vmatpush.msra.mxu0 %v286_v33  ;;  %v280_v39 = vld [vmem:[#allocation10 + $0x48] sm:$0xff]  ;;  %v278_v42 = vld [vmem:[#allocation10 + $0x38] sm:$0xff]  ;;  %v277_v43 = vld [vmem:[#allocation10 + $0x30] sm:$0xff] }
  0x22   :  { %174 = vmatpush.msrb.mxu1 %v151_v6  ;;  %196 = vmatpush.msra.mxu2 %v148_v23  ;;  %v276_v44 = vld [vmem:[#allocation10 + $0x28] sm:$0xff]  ;;  %v275_v47 = vld [vmem:[#allocation10 + $0x20] sm:$0xff]  ;;  %v274_v49 = vld [vmem:[#allocation10 + $0x18] sm:$0xff] }
  0x23   :  { %292 = vmatpush.msra.mxu0 %v285_v34  ;;  %v273_v53 = vld [vmem:[#allocation10 + $0x10] sm:$0xff]  ;;  %v272_v55 = vld [vmem:[#allocation10 + $0x8] sm:$0xff]  ;;  %v271_v60 = vld [vmem:[#allocation10] sm:$0xff] }
  0x24   :  { %175 = vmatpush.msrb.mxu1 %v149_v7  ;;  %197 = vmatpush.msra.mxu2 %v146_v24  ;;  %v347_v62 = vld [vmem:[%s590_s7] ss:$0 sm:$0xff] }
  0x25   :  { %335 = vmatmul.msk.f32.vlgmr.msra.gmra.mxu2 %vm120_vm0, %v144_v10  ;;  %293 = vmatpush.msra.mxu0 %v284_v35  ;;  %v348_v1 = vld [vmem:[%s591_s8] ss:$0 sm:$0xff] }
  0x26   :  { %176 = vmatpush.msrb.mxu1 %v147_v8  ;;  %v349_v4 = vld [vmem:[#allocation2] ss:$0 sm:$0xff] }
  0x27   :  { %294 = vmatpush.msra.mxu0 %v283_v36 }
  0x28   :  { %177 = vmatpush.msrb.mxu1 %v145_v9 }
  0x29   :  { %334 = vmatmul.msk.f32.vlgmr.msrb.gmra.mxu1 %vm120_vm0, %v144_v10  ;;  %295 = vmatpush.msra.mxu0 %v282_v37 }
  0x2b   :  { %296 = vmatpush.msra.mxu0 %v281_v38 }
  0x2d   :  { %297 = vmatpush.msra.mxu0 %v280_v39 }
  0x2f   :  { %298 = vmatpush.msra.mxu0 %v279_v41 }
  0x31   :  { %299 = vmatpush.msra.mxu0 %v278_v42 }
  0x33   :  { %300 = vmatpush.msra.mxu0 %v277_v43 }
  0x35   :  { %301 = vmatpush.msra.mxu0 %v276_v44 }
  0x37   :  { %302 = vmatpush.msra.mxu0 %v275_v47 }
  0x39   :  { %303 = vmatpush.msra.mxu0 %v274_v49 }
  0x3b   :  { %304 = vmatpush.msra.mxu0 %v273_v53 }
  0x3d   :  { %305 = vmatpush.msra.mxu0 %v272_v55 }
  0x3f   :  { %306 = vmatpush.msra.mxu0 %v271_v60 }
  0x9e   :  { %v141_v11 = vpop.f32.mrf.mxu1 }
  0x9f   :  { %v142_v17 = vadd.f32 %v346_v14, %v141_v11 }
  0xa6   :  { %v179_v15 = vpop.f32.mrf.mxu1 }
  0xa7   :  { %v180_v16 = vadd.f32 %v179_v15, %v155_v13 }
  0xa8   :  { %v199_v31 = vpop.f32.mrf.mxu2 }
  0xa9   :  { %217 = vmatpush.xpose.msra.mxu3 %v180_v16  ;;  %v200_v32 = vadd.f32 %v199_v31, %v156_v30 }
  0xac   :  { %218 = vmatmul.f32.vlgmr.msra.gmra.mxu3 %v142_v17 }
  0xad   :  { %266 = vmatpush.msrb.mxu3 %v200_v32 }
 0x12f   :  { %v219_v19 = vpop.f32.mrf.mxu3 }
 0x130   :  { %v222_v20 = vmul.f32 0.25, %v219_v19 }
 0x132   :  { %v224_v21 = vsel %vm223_vm1, %v222_v20, -inf }
 0x133   :  { %225 = vmax.xlane.f32.xlu0 %v224_v21 }
 0x1a6   :  { %v226_v25 = vpop.xlane.xlu0 %225 }
 0x1a7   :  { %v227_v26 = vsub.f32 %v222_v20, %v226_v25 }
 0x1a9   :  { %v228_v27 = vmul.f32 1.442695, %v227_v26 }
 0x1ab   :  { %350 = vpow2.f32 %v228_v27 }
 0x1b1   :  { %v351_v28 = vpop.eup %350 }
 0x1b2   :  { %v230_v29 = vsel %vm223_vm1, %v351_v28, 0.0 }
 0x1b3   :  { %231 = vadd.xlane.f32.xlu0 %v230_v29 }
 0x226   :  { %v232_v40 = vpop.xlane.xlu0 %231 }
 0x227   :  { %352 = vrcp.f32 %v232_v40  ;;  %v244_v50 = vand.u32 2147483648, %v232_v40  ;;  %v242_v52 = vand.u32 2147483647, %v232_v40  ;;  %vm238_vm3 = vweird.f32 %v232_v40 }
 0x229   :  { %v245_v56 = vor.u32 1.1754944e-38, %v244_v50  ;;  %vm243_vm5 = vcmp.eq.f32.partialorder %v242_v52, 8.507059e+37 }
 0x22d   :  { %v353_v45 = vpop.eup %352 }
 0x22e   :  { %v234_v46 = vmul.f32 %v353_v45, %v232_v40  ;;  %vm239_vm2 = vweird.f32 %v353_v45 }
 0x22f   :  { %vm240_vm4 = vmor %vm238_vm3, %vm239_vm2 }
 0x230   :  { %v235_v48 = vsub.f32 1.0, %v234_v46 }
 0x232   :  { %v236_v51 = vmul.f32 %v353_v45, %v235_v48 }
 0x234   :  { %v237_v54 = vadd.f32 %v353_v45, %v236_v51 }
 0x236   :  { %v241_v57 = vsel %vm240_vm4, %v353_v45, %v237_v54 }
 0x237   :  { %v246_v58 = vsel %vm243_vm5, %v245_v56, %v241_v57 }
 0x238   :  { %v247_v59 = vmul.f32 %v351_v28, %v246_v58 }
 0x23a   :  { %336 = vmatmul.msk.f32.vlgmr.msrb.gmra.mxu3 %vm223_vm1, %v247_v59 }
 0x2bd   :  { %v268_v61 = vpop.f32.mrf.mxu3 }
 0x2be   :  { %307 = vmatmul.f32.vlgmr.msra.gmra.mxu0 %v268_v61 }
 0x33b   :  { %v308_v63 = vpop.f32.mrf.mxu0 }
 0x33c   :  { %v309_v0 = vadd.f32 %v347_v62, %v308_v63 }
 0x33e   :  { %v311_v2 = vmax.f32 %v309_v0, 0.0 }
 0x340   :  { %v316_v3 = vmul.f32 %v348_v1, %v311_v2 }
 0x342   :  { %317 = vadd.xlane.f32.xlu1 %v316_v3 }
 0x3b5   :  { %v318_v5 = vpop.xlane.xlu1 %317 }
 0x3b6   :  { %v323_v6 = vadd.f32 %v349_v4, %v318_v5 }
 0x3b8   :  { %325 = vst.msk [vmem:[%s593_s10] sm:$0xff] %vm324_vm6, %v323_v6 }
 0x3b9   :  { %330 = vsyncpa [#allocation4], 1 }
 0x3ba   :  { %331 = vsyncpa [#allocation6], 1 }
 0x3bb   :  { %332 = vsyncpa [#allocation9], 1 }

</bundles_post_ra>
